<compile_context>
chip_gen: v6e
topology: v6e:2x2x1
jax: 0.10.0
libtpu: 0.0.40
codegen_flags: <defaults>
</compile_context>

<pallas_src>
import functools

import jax
import jax.numpy as jnp
from jax.experimental import pallas as pl
from jax.experimental.pallas import tpu as pltpu


# ----------------------------- Pallas kernel -------------------------------

def rmsnorm_kernel(x_ref, w_ref, o_ref, *, eps, inv_h):
    # x: (TILE_M, H_pad) native dtype, w: (1, H_pad) f32, o: (TILE_M, H_pad).
    x = x_ref[...].astype(jnp.float32)
    # sum(x^2) * (1/H_true): zero-padded lanes contribute 0, so dividing by
    # the true hidden size is exactly mean-of-squares over the real H.
    var = jnp.sum(x * x, axis=-1, keepdims=True) * inv_h
    # rsqrt goes to the EUP; the surrounding muls are plain VPU work.
    o_ref[...] = (w_ref[...] * (x * jax.lax.rsqrt(var + eps))).astype(o_ref.dtype)


# ------------------------------- helpers ------------------------------------

def _round_up(x, m):
    return ((x + m - 1) // m) * m


def _sublane_align(dtype):
    # f32 -> 8, bf16 -> 16, int8/fp8 -> 32 (sub-32-bit dtypes pack sublanes).
    itemsize = jnp.dtype(dtype).itemsize
    return max(8, 32 // max(1, itemsize))


def _pick_tile_m(m_rows, h_pad, in_dtype, out_dtype, budget_bytes=24 << 20):
    """Row-tile size sized against real pipeline bytes:
    2 buffers x (input block + output block) + ~1 f32 block (upcast temp)."""
    in_b = jnp.dtype(in_dtype).itemsize
    out_b = jnp.dtype(out_dtype).itemsize
    per_row = 2 * h_pad * (in_b + out_b) + 4 * h_pad
    align = _sublane_align(in_dtype)

    tm = max(align, budget_bytes // max(1, per_row))
    tm = (tm // align) * align
    tm = min(tm, 1024)

    # Keep >= 2 grid steps whenever the row count permits, so the "parallel"
    # row-tile axis is actually split across v7x's two TensorCores and the
    # auto double-buffering has work to overlap. Harmless on v5e/v6e.
    tm_cap = max(align, _round_up(pl.cdiv(m_rows, 2), align))
    tm = max(align, min(tm, tm_cap))
    return tm


# ------------------------------- wrapper ------------------------------------

def pallas_rmsnorm(x, weight, eps=1e-6, out_dtype=jnp.float32):
    """RMSNorm over the last axis. x: (..., H) any float dtype; weight: (H,).

    Default out_dtype=float32 matches the PyTorch module (which up-casts).
    Pass out_dtype=x.dtype for the bandwidth-saving `.type_as(x)` variant."""
    lead = x.shape[:-1]
    hidden = x.shape[-1]
    x2 = x.reshape(-1, hidden)
    m_rows = x2.shape[0]

    # Lane-dense hidden: pad H to a multiple of 128 so stores are unmasked
    # full-lane vst's. Pad columns are zero -> contribute 0 to sum(x^2).
    h_pad = _round_up(hidden, 128)
    w = weight.astype(jnp.float32).reshape(1, hidden)
    if h_pad != hidden:
        x2 = jnp.pad(x2, ((0, 0), (0, h_pad - hidden)))
        w = jnp.pad(w, ((0, 0), (0, h_pad - hidden)))

    tm = _pick_tile_m(m_rows, h_pad, x2.dtype, out_dtype)
    grid = (pl.cdiv(m_rows, tm),)  # ragged last block: masked writes, no host pad

    in_bytes = jnp.dtype(x2.dtype).itemsize
    out_bytes = jnp.dtype(out_dtype).itemsize
    cost = pl.CostEstimate(
        flops=4 * m_rows * h_pad,
        transcendentals=m_rows,
        bytes_accessed=m_rows * h_pad * (in_bytes + out_bytes) + h_pad * 4,
    )

    out = pl.pallas_call(
        functools.partial(rmsnorm_kernel, eps=eps, inv_h=1.0 / hidden),
        out_shape=jax.ShapeDtypeStruct((m_rows, h_pad), out_dtype),
        grid=grid,
        in_specs=[
            # Row tile, full (padded) hidden dim on the lane axis.
            pl.BlockSpec((tm, h_pad), lambda i: (i, 0)),
            # Weight: one tiny block, same for every grid step.
            pl.BlockSpec((1, h_pad), lambda i: (0, 0)),
        ],
        out_specs=pl.BlockSpec((tm, h_pad), lambda i: (i, 0)),
        compiler_params=pltpu.CompilerParams(
            dimension_semantics=("parallel",),
            # Explicit scoped-VMEM limit: safe under v7x's 64 MiB physical
            # VMEM and well above what the sized tiles need (~24 MiB).
            vmem_limit_bytes=48 * 1024 * 1024,
        ),
        cost_estimate=cost,
    )(x2, w)

    if h_pad != hidden:
        out = out[:, :hidden]
    return out.reshape(*lead, hidden)


# ------------------------ pure-JAX reference (check) ------------------------

def rmsnorm_ref(x, weight, eps=1e-6):
    h = x.astype(jnp.float32)
    var = jnp.mean(h * h, axis=-1, keepdims=True)
    return weight.astype(jnp.float32) * (h * jax.lax.rsqrt(var + eps))


# --------------------------------- main --------------------------------------

if __name__ == "__main__":
    key = jax.random.PRNGKey(0)
    k1, k2, k3, k4 = jax.random.split(key, 4)

    fwd = jax.jit(pallas_rmsnorm)

    # Case 1: small f32 input, hidden NOT a multiple of 128 (exercises the
    # lane-padding path) and a ragged row count (exercises masked last block).
    x = jax.random.normal(k1, (2, 8, 32), jnp.float32)
    w = 1.0 + 0.1 * jax.random.normal(k2, (32,), jnp.float32)
    out = jax.block_until_ready(fwd(x, w))
    ref = rmsnorm_ref(x, w)
    assert out.shape == x.shape and out.dtype == jnp.float32
    assert bool(jnp.allclose(out, ref, atol=1e-5, rtol=1e-5)), "mismatch (f32 case)"

    # Case 2: bf16 input, lane-dense hidden, row count not a tile multiple
    # (exercises in-kernel upcast + ragged grid without any host pad/slice).
    xb = jax.random.normal(k3, (3, 5, 256), jnp.float32).astype(jnp.bfloat16)
    wb = 1.0 + 0.1 * jax.random.normal(k4, (256,), jnp.float32)
    outb = jax.block_until_ready(fwd(xb, wb))
    refb = rmsnorm_ref(xb, wb)
    assert outb.shape == (3, 5, 256) and outb.dtype == jnp.float32
    assert bool(jnp.allclose(outb, refb, atol=1e-4, rtol=1e-4)), "mismatch (bf16 case)"

    print("KERNEL_OK")
</pallas_src>

<mosaic_0001>
module attributes {stable_mosaic.version = 11 : i64} {
  func.func @rmsnorm_kernel(%arg0: i32, %arg1: memref<8x128xf32, #tpu.memory_space<vmem>>, %arg2: memref<1x128xf32, #tpu.memory_space<vmem>>, %arg3: memref<8x128xf32, #tpu.memory_space<vmem>>) attributes {dimension_semantics = [#tpu.dimension_semantics<parallel>], iteration_bounds = array<i64: 2>, scalar_prefetch = 0 : i64, scratch_operands = 0 : i64, tpu.core_type = #tpu.core_type<tc>, window_params = [{transform_indices = @transform_0, window_bounds = array<i64: 8, 128>}, {pipeline_mode = #tpu.pipeline_mode<synchronous>, transform_indices = @transform_1, window_bounds = array<i64: 1, 128>}, {transform_indices = @transform_2, window_bounds = array<i64: 8, 128>}]} {
    %c0 = arith.constant 0 : index
    %c0_0 = arith.constant 0 : index
    %0 = vector.load %arg1[%c0, %c0_0] : memref<8x128xf32, #tpu.memory_space<vmem>>, vector<8x128xf32>
    %1 = arith.mulf %0, %0 : vector<8x128xf32>
    %cst = arith.constant dense<0.000000e+00> : vector<8xf32>
    %2 = vector.multi_reduction <add>, %1, %cst [1] : vector<8x128xf32> to vector<8xf32>
    %3 = vector.shape_cast %2 : vector<8xf32> to vector<8x1xf32>
    %cst_1 = arith.constant 3.125000e-02 : f32
    %4 = vector.broadcast %cst_1 : f32 to vector<8x1xf32>
    %5 = arith.mulf %3, %4 : vector<8x1xf32>
    %c0_2 = arith.constant 0 : index
    %c0_3 = arith.constant 0 : index
    %6 = vector.load %arg2[%c0_2, %c0_3] : memref<1x128xf32, #tpu.memory_space<vmem>>, vector<1x128xf32>
    %cst_4 = arith.constant 9.99999997E-7 : f32
    %7 = vector.broadcast %cst_4 : f32 to vector<8x1xf32>
    %8 = arith.addf %5, %7 : vector<8x1xf32>
    %9 = math.rsqrt %8 : vector<8x1xf32>
    %10 = vector.broadcast %9 : vector<8x1xf32> to vector<8x128xf32>
    %11 = arith.mulf %0, %10 : vector<8x128xf32>
    %12 = vector.broadcast %6 : vector<1x128xf32> to vector<8x128xf32>
    %13 = arith.mulf %12, %11 : vector<8x128xf32>
    %c0_5 = arith.constant 0 : index
    %c0_6 = arith.constant 0 : index
    %14 = vector.load %arg3[%c0_5, %c0_6] : memref<8x128xf32, #tpu.memory_space<vmem>>, vector<8x128xf32>
    tpu.vector_store %arg3[%c0_5, %c0_6], %13 {strides = array<i32>} : memref<8x128xf32, #tpu.memory_space<vmem>>, vector<8x128xf32>,
    return
  }
  func.func @transform_0(%arg0: i32) -> (i32, i32) {
    %c0_i32 = arith.constant 0 : i32
    %c0_i32_0 = arith.constant 0 : i32
    return %arg0, %c0_i32 : i32, i32
  }
  func.func @transform_1(%arg0: i32) -> (i32, i32) {
    %c0_i32 = arith.constant 0 : i32
    %c0_i32_0 = arith.constant 0 : i32
    %c0_i32_1 = arith.constant 0 : i32
    return %c0_i32, %c0_i32_0 : i32, i32
  }
  func.func @transform_2(%arg0: i32) -> (i32, i32) {
    %c0_i32 = arith.constant 0 : i32
    %c0_i32_0 = arith.constant 0 : i32
    return %arg0, %c0_i32 : i32, i32
  }
}

</mosaic_0001>

<bundles_post_ra>
// kernel: pallas_rmsnorm.1
= control target key start
LH: loop header
LB: loop body
LE: loop exit
PB: predicated region body
PF: predicated region fallthrough
CT: control target
= control target key end

     0   :  { %s252_s9 = smov 0   ;;  %s266_s0 = inlined_call_operand.vmem [shape: f32[16,128], index: 0, kind: input, shape index: {}]   ;;  %s267_s1 = inlined_call_operand.vmem [shape: f32[1,128], index: 1, kind: input, shape index: {}]   ;;  %s268_s2 = inlined_call_operand.vmem [shape: f32[16,128], index: 2, kind: output, shape index: {}]  }
   0x1 LB: > { %s209_s10 = sadd.s32 4294967295, %s235_s9   ;;  %p213_p0 = scmp.ge.s32.totalorder %s235_s9, 1  ;;  %s235_s9 = sphi %s252_s9, %s12_s9  }
   0x2   : > { %p111_p1 = scmp.lt.s32.totalorder %s235_s9, 3 }
   0x4   : > { %p112_p2 = pnand %p213_p0, %p111_p1 }
   0x5   : > { %p131_p3 = scmp.lt.s32.totalorder (!%p112_p2), %s209_s10, 1 }
   0x6   : > { %115 = sbr.rel (%p112_p2) target bundleno = 178 (0xb2), region = 28 }
   0xb   : > { %s270_s10 = smov (!%p131_p3, %s209_s10), 1  ;;  %v216_v6 = vld [vmem:[%s267_s1] ss:$0 sm:$0xff] }
   0xc   : > { %s214_s11 = sshll.u32 %s270_s10, 3 }
   0xd   : > { %s134_s14 = scalar_lea.vmem %s266_s0, %s214_s11  ;;  %s138_s19 = scalar_lea.vmem %s268_s2, %s214_s11 }
   0xe   : > { %v139_v0 = vld [vmem:[%s134_s14] sm:$0xff] }
   0xf   : > { %v140_v1 = vmul.f32 %v139_v0, %v139_v0 }
  0x11   : > { %141 = vadd.xlane.f32.xlu0 %v140_v1 }
  0x9a   : > { %v142_v2 = vpop.xlane.xlu0 %141 }
  0x9b   : > { %v143_v3 = vmul.f32 0.03125, %v142_v2 }
  0x9d   : > { %v145_v4 = vadd.f32 1e-06, %v143_v3 }
  0x9f   : > { %227 = vrsqrt.f32 %v145_v4 }
  0xac   : > { %v228_v5 = vpop.eup %227 }
  0xad   : > { %v147_v7 = vmul.f32 %v228_v5, %v139_v0 }
  0xaf   : > { %v154_v8 = vmul.f32 %v216_v6, %v147_v7 }
  0xb1   : > { %155 = vst [vmem:[%s138_s19] sm:$0xff] %v154_v8 }
  0xb2 PF: > { %s12_s9 = sadd.s32 1, %s235_s9  }
  0xb3   : > { %p9_p4 = scmp.ge.s32.totalorder %s12_s9, 4  }
  0xb5   :  { %11 = sbr.rel (!%p9_p4) target bundleno = 1 (0x1), region = 58 }

</bundles_post_ra>
